<compile_context>
chip_gen: v6e
topology: v6e:2x2x1
jax: 0.10.0
libtpu: 0.0.40
codegen_flags: <defaults>
</compile_context>

<pallas_src>
import functools

import numpy as np

import jax
import jax.numpy as jnp
from jax import lax
from jax.experimental import pallas as pl
from jax.experimental.pallas import tpu as pltpu


def _round_up(x, m):
    return (x + m - 1) // m * m


def _tap_masks(H, W):
    """(9, H*W) multiplicative masks: mask[t, h*W+w] = 1 iff tap offset
    (dy, dx) = (t//3 - 1, t%3 - 1) stays inside the image ('same' zero padding)."""
    p = np.arange(H * W)
    h, w = p // W, p % W
    rows = []
    for dy in (-1, 0, 1):
        for dx in (-1, 0, 1):
            valid = (h + dy >= 0) & (h + dy < H) & (w + dx >= 0) & (w + dx < W)
            rows.append(valid.astype(np.float32))
    return np.stack(rows, axis=0)


def _conv_block_kernel(x_ref, m_ref, w1_ref, b1_ref, w2_ref, b2_ref, o_ref, *, H, W):
    """Fused ConvBlock for one batch element; NCHW with H*W flattened onto lanes.

    x_ref:  (1, Cip, HW)   input features (channels padded to a multiple of 8)
    m_ref:  (9, HW)        per-tap boundary masks (1.0 inside image, 0.0 outside)
    w1_ref: (Cop, 9*Cip)   stage-1 conv weights, BN scale folded in, tap-major
    b1_ref: (Cop, 1)       stage-1 folded BN bias
    w2_ref: (Cop, 9*Cop)   stage-2 conv weights (BN folded)
    b2_ref: (Cop, 1)       stage-2 folded BN bias
    o_ref:  (1, Cop, HW)
    """
    HW = H * W
    masks = m_ref[...]                                            # (9, HW)
    # Tap order must match _tap_masks and the wrapper's weight reshape:
    # dy-major, dx-minor, channel innermost.
    taps = tuple((dy, dx, (dy * W + dx) % HW)
                 for dy in (-1, 0, 1) for dx in (-1, 0, 1))

    def conv_bn_lrelu(feat, w_ref_, b_ref_):
        # feat: (C, HW), flattened spatial on the lane axis.
        # Lane-shift trick: slice a doubled copy so that
        #   shifted[:, p] == feat[:, (p + d) % HW]
        # -> pure lane shifts, no lane<->sublane relayout; the concat is
        # lane-aligned because HW is a multiple of 128.
        doubled = jnp.concatenate([feat, feat], axis=1)           # (C, 2*HW)
        cols = []
        for t, (dy, dx, k) in enumerate(taps):
            if dy == 0 and dx == 0:
                cols.append(feat)                                 # center tap: mask is all-ones
            else:
                cols.append(doubled[:, k:k + HW] * masks[t:t + 1, :])
        cols = jnp.concatenate(cols, axis=0)                      # (9*C, HW) im2col in VMEM
        # One MXU matmul per stage: (Cop, 9*C) x (9*C, HW), f32 accumulation.
        acc = jnp.dot(w_ref_[...], cols, preferred_element_type=jnp.float32)
        y = acc + b_ref_[...]                                     # folded BatchNorm bias
        return jnp.maximum(y, 0.1 * y)                            # LeakyReLU(0.1), f32 on VPU

    x = x_ref[0]                                                  # (Cip, HW)
    h1 = conv_bn_lrelu(x, w1_ref, b1_ref)                         # stage 1, stays in VMEM
    y2 = conv_bn_lrelu(h1.astype(x.dtype), w2_ref, b2_ref)        # stage 2
    o_ref[0] = y2.astype(o_ref.dtype)


def _fold_conv_bn(w, gamma, beta, mean, var, c_in_pad, c_out_pad, eps, compute_dtype):
    """Fold inference-mode BN into the conv weight.  Returns the tap-major folded
    weight (Cop, 9*Cip) and the folded bias (Cop, 1)."""
    c_out, c_in = w.shape[0], w.shape[1]
    scale = gamma / jnp.sqrt(var + eps)                                   # (c_out,)
    wt = jnp.transpose(w, (0, 2, 3, 1)) * scale[:, None, None, None]      # (c_out,3,3,c_in)
    wt = jnp.pad(wt, ((0, c_out_pad - c_out), (0, 0), (0, 0), (0, c_in_pad - c_in)))
    wf = wt.reshape(c_out_pad, 9 * c_in_pad).astype(compute_dtype)
    bias = jnp.pad(beta - mean * scale, (0, c_out_pad - c_out)).reshape(c_out_pad, 1)
    return wf, bias.astype(jnp.float32)


def conv_block(x_nchw, params, *, eps=1e-5, compute_dtype=jnp.float32):
    """ConvBlock.forward: NCHW in, NCHW out (inference-mode BatchNorm).

    compute_dtype=jnp.bfloat16 halves activation/weight bytes and doubles the
    MXU rate on v6e/v7x (accumulation stays f32); the f32 default matches the
    PyTorch reference to ~1e-4.
    """
    N, C_in, H, W = x_nchw.shape
    C_out = params["w1"].shape[0]
    HW = H * W
    Cip = _round_up(C_in, 8)     # sublane-align channel counts
    Cop = _round_up(C_out, 8)

    w1f, b1 = _fold_conv_bn(params["w1"], params["g1"], params["b1"],
                            params["m1"], params["v1"], Cip, Cop, eps, compute_dtype)
    w2f, b2 = _fold_conv_bn(params["w2"], params["g2"], params["b2"],
                            params["m2"], params["v2"], Cop, Cop, eps, compute_dtype)

    # NCHW -> (N, C, H*W): a pure view (no transpose); H*W becomes the lane axis.
    x_flat = x_nchw.reshape(N, C_in, HW)
    if Cip != C_in:
        x_flat = jnp.pad(x_flat, ((0, 0), (0, Cip - C_in), (0, 0)))
    x_flat = x_flat.astype(compute_dtype)

    masks = jnp.asarray(_tap_masks(H, W), dtype=compute_dtype)            # (9, HW) constant

    kernel = functools.partial(_conv_block_kernel, H=H, W=W)

    out_flat = pl.pallas_call(
        kernel,
        out_shape=jax.ShapeDtypeStruct((N, Cop, HW), jnp.float32),
        grid_spec=pltpu.PrefetchScalarGridSpec(
            num_scalar_prefetch=0,
            grid=(N,),
            in_specs=[
                pl.BlockSpec((1, Cip, HW), lambda n: (n, 0, 0)),
                pl.BlockSpec((9, HW), lambda n: (0, 0)),          # constant block
                pl.BlockSpec((Cop, 9 * Cip), lambda n: (0, 0)),   # constant block
                pl.BlockSpec((Cop, 1), lambda n: (0, 0)),         # constant block
                pl.BlockSpec((Cop, 9 * Cop), lambda n: (0, 0)),   # constant block
                pl.BlockSpec((Cop, 1), lambda n: (0, 0)),         # constant block
            ],
            out_specs=pl.BlockSpec((1, Cop, HW), lambda n: (n, 0, 0)),
        ),
        compiler_params=pltpu.CompilerParams(
            dimension_semantics=("parallel",)),   # batch axis over both v7x TCs
    )(x_flat, masks, w1f, b1, w2f, b2)

    return out_flat[:, :C_out, :].reshape(N, C_out, H, W)


def _reference_conv_block(x_nchw, params, eps=1e-5):
    """Pure-JAX (lax.conv) reference for a correctness check."""
    def stage(x, w, g, b, m, v):
        y = lax.conv_general_dilated(
            x, w, window_strides=(1, 1), padding="SAME",
            dimension_numbers=("NCHW", "OIHW", "NCHW"))
        s = g / jnp.sqrt(v + eps)
        y = y * s[None, :, None, None] + (b - m * s)[None, :, None, None]
        return jnp.where(y > 0, y, 0.1 * y)

    y = stage(x_nchw, params["w1"], params["g1"], params["b1"], params["m1"], params["v1"])
    return stage(y, params["w2"], params["g2"], params["b2"], params["m2"], params["v2"])


def make_params(key, ch_in, ch_out):
    ks = jax.random.split(key, 8)
    return {
        # conv weights (OIHW, bias=False)
        "w1": 0.1 * jax.random.normal(ks[0], (ch_out, ch_in, 3, 3), jnp.float32),
        "w2": 0.1 * jax.random.normal(ks[1], (ch_out, ch_out, 3, 3), jnp.float32),
        # BatchNorm2d(ch_out) params + running stats (deterministic, non-trivial)
        "g1": 1.0 + 0.1 * jax.random.normal(ks[2], (ch_out,), jnp.float32),
        "b1": 0.1 * jax.random.normal(ks[3], (ch_out,), jnp.float32),
        "m1": 0.05 * jax.random.normal(ks[4], (ch_out,), jnp.float32),
        "v1": 1.0 + 0.1 * jax.nn.sigmoid(jax.random.normal(ks[5], (ch_out,), jnp.float32)),
        "g2": 1.0 + 0.1 * jax.random.normal(ks[6], (ch_out,), jnp.float32),
        "b2": 0.1 * jax.random.normal(ks[7], (ch_out,), jnp.float32),
        "m2": 0.05 * jnp.arange(ch_out, dtype=jnp.float32) / max(ch_out, 1),
        "v2": jnp.ones((ch_out,), jnp.float32),
    }


if __name__ == "__main__":
    key = jax.random.PRNGKey(0)
    k_x, k_p = jax.random.split(key)

    N, C_IN, C_OUT, H, W = 2, 4, 8, 16, 16
    x = jax.random.normal(k_x, (N, C_IN, H, W), jnp.float32)
    params = make_params(k_p, C_IN, C_OUT)

    # TODO(synk): training-mode BatchNorm (batch statistics + running-stat
    # updates) is not implemented; this matches nn.BatchNorm2d.eval().
    out = jax.jit(conv_block)(x, params)
    out = jax.block_until_ready(out)

    ref = _reference_conv_block(x, params)
    assert out.shape == (N, C_OUT, H, W)
    assert jnp.max(jnp.abs(out - ref)) < 1e-4

    print("KERNEL_OK")
</pallas_src>

<mosaic_0001>
module attributes {stable_mosaic.version = 11 : i64} {
  func.func @_conv_block_kernel(%arg0: i32, %arg1: memref<1x8x256xf32, #tpu.memory_space<vmem>>, %arg2: memref<9x256xf32, #tpu.memory_space<vmem>>, %arg3: memref<8x72xf32, #tpu.memory_space<vmem>>, %arg4: memref<8x1xf32, #tpu.memory_space<vmem>>, %arg5: memref<8x72xf32, #tpu.memory_space<vmem>>, %arg6: memref<8x1xf32, #tpu.memory_space<vmem>>, %arg7: memref<1x8x256xf32, #tpu.memory_space<vmem>>) attributes {dimension_semantics = [#tpu.dimension_semantics<parallel>], iteration_bounds = array<i64: 2>, scalar_prefetch = 0 : i64, scratch_operands = 0 : i64, tpu.core_type = #tpu.core_type<tc>, window_params = [{transform_indices = @transform_0, window_bounds = array<i64: 1, 8, 256>}, {pipeline_mode = #tpu.pipeline_mode<synchronous>, transform_indices = @transform_1, window_bounds = array<i64: 9, 256>}, {pipeline_mode = #tpu.pipeline_mode<synchronous>, transform_indices = @transform_2, window_bounds = array<i64: 8, 72>}, {pipeline_mode = #tpu.pipeline_mode<synchronous>, transform_indices = @transform_3, window_bounds = array<i64: 8, 1>}, {pipeline_mode = #tpu.pipeline_mode<synchronous>, transform_indices = @transform_4, window_bounds = array<i64: 8, 72>}, {pipeline_mode = #tpu.pipeline_mode<synchronous>, transform_indices = @transform_5, window_bounds = array<i64: 8, 1>}, {transform_indices = @transform_6, window_bounds = array<i64: 1, 8, 256>}]} {
    %c0 = arith.constant 0 : index
    %c0_0 = arith.constant 0 : index
    %0 = vector.load %arg2[%c0, %c0_0] : memref<9x256xf32, #tpu.memory_space<vmem>>, vector<9x256xf32>
    %c0_1 = arith.constant 0 : index
    %c0_2 = arith.constant 0 : index
    %c0_3 = arith.constant 0 : index
    %1 = vector.load %arg1[%c0_1, %c0_2, %c0_3] : memref<1x8x256xf32, #tpu.memory_space<vmem>>, vector<1x8x256xf32>
    %2 = vector.shape_cast %1 : vector<1x8x256xf32> to vector<8x256xf32>
    %3 = tpu.concatenate %2, %2 in 1 : vector<8x256xf32>, vector<8x256xf32> -> vector<8x512xf32>
    %4 = vector.extract_strided_slice %3 {offsets = [0, 239], sizes = [8, 256], strides = [1, 1]} : vector<8x512xf32> to vector<8x256xf32>
    %5 = vector.extract_strided_slice %0 {offsets = [0, 0], sizes = [1, 256], strides = [1, 1]} : vector<9x256xf32> to vector<1x256xf32>
    %6 = vector.broadcast %5 : vector<1x256xf32> to vector<8x256xf32>
    %7 = arith.mulf %4, %6 : vector<8x256xf32>
    %8 = vector.extract_strided_slice %3 {offsets = [0, 240], sizes = [8, 256], strides = [1, 1]} : vector<8x512xf32> to vector<8x256xf32>
    %9 = vector.extract_strided_slice %0 {offsets = [1, 0], sizes = [1, 256], strides = [1, 1]} : vector<9x256xf32> to vector<1x256xf32>
    %10 = vector.broadcast %9 : vector<1x256xf32> to vector<8x256xf32>
    %11 = arith.mulf %8, %10 : vector<8x256xf32>
    %12 = vector.extract_strided_slice %3 {offsets = [0, 241], sizes = [8, 256], strides = [1, 1]} : vector<8x512xf32> to vector<8x256xf32>
    %13 = vector.extract_strided_slice %0 {offsets = [2, 0], sizes = [1, 256], strides = [1, 1]} : vector<9x256xf32> to vector<1x256xf32>
    %14 = vector.broadcast %13 : vector<1x256xf32> to vector<8x256xf32>
    %15 = arith.mulf %12, %14 : vector<8x256xf32>
    %16 = vector.extract_strided_slice %3 {offsets = [0, 255], sizes = [8, 256], strides = [1, 1]} : vector<8x512xf32> to vector<8x256xf32>
    %17 = vector.extract_strided_slice %0 {offsets = [3, 0], sizes = [1, 256], strides = [1, 1]} : vector<9x256xf32> to vector<1x256xf32>
    %18 = vector.broadcast %17 : vector<1x256xf32> to vector<8x256xf32>
    %19 = arith.mulf %16, %18 : vector<8x256xf32>
    %20 = vector.extract_strided_slice %3 {offsets = [0, 1], sizes = [8, 256], strides = [1, 1]} : vector<8x512xf32> to vector<8x256xf32>
    %21 = vector.extract_strided_slice %0 {offsets = [5, 0], sizes = [1, 256], strides = [1, 1]} : vector<9x256xf32> to vector<1x256xf32>
    %22 = vector.broadcast %21 : vector<1x256xf32> to vector<8x256xf32>
    %23 = arith.mulf %20, %22 : vector<8x256xf32>
    %24 = vector.extract_strided_slice %3 {offsets = [0, 15], sizes = [8, 256], strides = [1, 1]} : vector<8x512xf32> to vector<8x256xf32>
    %25 = vector.extract_strided_slice %0 {offsets = [6, 0], sizes = [1, 256], strides = [1, 1]} : vector<9x256xf32> to vector<1x256xf32>
    %26 = vector.broadcast %25 : vector<1x256xf32> to vector<8x256xf32>
    %27 = arith.mulf %24, %26 : vector<8x256xf32>
    %28 = vector.extract_strided_slice %3 {offsets = [0, 16], sizes = [8, 256], strides = [1, 1]} : vector<8x512xf32> to vector<8x256xf32>
    %29 = vector.extract_strided_slice %0 {offsets = [7, 0], sizes = [1, 256], strides = [1, 1]} : vector<9x256xf32> to vector<1x256xf32>
    %30 = vector.broadcast %29 : vector<1x256xf32> to vector<8x256xf32>
    %31 = arith.mulf %28, %30 : vector<8x256xf32>
    %32 = vector.extract_strided_slice %3 {offsets = [0, 17], sizes = [8, 256], strides = [1, 1]} : vector<8x512xf32> to vector<8x256xf32>
    %33 = vector.extract_strided_slice %0 {offsets = [8, 0], sizes = [1, 256], strides = [1, 1]} : vector<9x256xf32> to vector<1x256xf32>
    %34 = vector.broadcast %33 : vector<1x256xf32> to vector<8x256xf32>
    %35 = arith.mulf %32, %34 : vector<8x256xf32>
    %36 = tpu.concatenate %7, %11, %15, %19, %2, %23, %27, %31, %35 in 0 : vector<8x256xf32>, vector<8x256xf32>, vector<8x256xf32>, vector<8x256xf32>, vector<8x256xf32>, vector<8x256xf32>, vector<8x256xf32>, vector<8x256xf32>, vector<8x256xf32> -> vector<72x256xf32>
    %c0_4 = arith.constant 0 : index
    %c0_5 = arith.constant 0 : index
    %37 = vector.load %arg3[%c0_4, %c0_5] : memref<8x72xf32, #tpu.memory_space<vmem>>, vector<8x72xf32>
    %cst = arith.constant dense<0.000000e+00> : vector<8x256xf32>
    %38 = tpu.matmul %37, %36, %cst {dimension_numbers = #tpu.dot_dimension_numbers<[1], [0], [0], [1], [0, 0, 1, 1], [], []>} : vector<8x72xf32>, vector<72x256xf32>, vector<8x256xf32> -> vector<8x256xf32>
    %c0_6 = arith.constant 0 : index
    %c0_7 = arith.constant 0 : index
    %39 = vector.load %arg4[%c0_6, %c0_7] : memref<8x1xf32, #tpu.memory_space<vmem>>, vector<8x1xf32>
    %40 = vector.broadcast %39 : vector<8x1xf32> to vector<8x256xf32>
    %41 = arith.addf %38, %40 : vector<8x256xf32>
    %cst_8 = arith.constant 1.000000e-01 : f32
    %42 = vector.broadcast %cst_8 : f32 to vector<8x256xf32>
    %43 = arith.mulf %42, %41 : vector<8x256xf32>
    %44 = arith.maximumf %41, %43 : vector<8x256xf32>
    %45 = tpu.concatenate %44, %44 in 1 : vector<8x256xf32>, vector<8x256xf32> -> vector<8x512xf32>
    %46 = vector.extract_strided_slice %45 {offsets = [0, 239], sizes = [8, 256], strides = [1, 1]} : vector<8x512xf32> to vector<8x256xf32>
    %47 = vector.extract_strided_slice %0 {offsets = [0, 0], sizes = [1, 256], strides = [1, 1]} : vector<9x256xf32> to vector<1x256xf32>
    %48 = vector.broadcast %47 : vector<1x256xf32> to vector<8x256xf32>
    %49 = arith.mulf %46, %48 : vector<8x256xf32>
    %50 = vector.extract_strided_slice %45 {offsets = [0, 240], sizes = [8, 256], strides = [1, 1]} : vector<8x512xf32> to vector<8x256xf32>
    %51 = vector.extract_strided_slice %0 {offsets = [1, 0], sizes = [1, 256], strides = [1, 1]} : vector<9x256xf32> to vector<1x256xf32>
    %52 = vector.broadcast %51 : vector<1x256xf32> to vector<8x256xf32>
    %53 = arith.mulf %50, %52 : vector<8x256xf32>
    %54 = vector.extract_strided_slice %45 {offsets = [0, 241], sizes = [8, 256], strides = [1, 1]} : vector<8x512xf32> to vector<8x256xf32>
    %55 = vector.extract_strided_slice %0 {offsets = [2, 0], sizes = [1, 256], strides = [1, 1]} : vector<9x256xf32> to vector<1x256xf32>
    %56 = vector.broadcast %55 : vector<1x256xf32> to vector<8x256xf32>
    %57 = arith.mulf %54, %56 : vector<8x256xf32>
    %58 = vector.extract_strided_slice %45 {offsets = [0, 255], sizes = [8, 256], strides = [1, 1]} : vector<8x512xf32> to vector<8x256xf32>
    %59 = vector.extract_strided_slice %0 {offsets = [3, 0], sizes = [1, 256], strides = [1, 1]} : vector<9x256xf32> to vector<1x256xf32>
    %60 = vector.broadcast %59 : vector<1x256xf32> to vector<8x256xf32>
    %61 = arith.mulf %58, %60 : vector<8x256xf32>
    %62 = vector.extract_strided_slice %45 {offsets = [0, 1], sizes = [8, 256], strides = [1, 1]} : vector<8x512xf32> to vector<8x256xf32>
    %63 = vector.extract_strided_slice %0 {offsets = [5, 0], sizes = [1, 256], strides = [1, 1]} : vector<9x256xf32> to vector<1x256xf32>
    %64 = vector.broadcast %63 : vector<1x256xf32> to vector<8x256xf32>
    %65 = arith.mulf %62, %64 : vector<8x256xf32>
    %66 = vector.extract_strided_slice %45 {offsets = [0, 15], sizes = [8, 256], strides = [1, 1]} : vector<8x512xf32> to vector<8x256xf32>
    %67 = vector.extract_strided_slice %0 {offsets = [6, 0], sizes = [1, 256], strides = [1, 1]} : vector<9x256xf32> to vector<1x256xf32>
    %68 = vector.broadcast %67 : vector<1x256xf32> to vector<8x256xf32>
    %69 = arith.mulf %66, %68 : vector<8x256xf32>
    %70 = vector.extract_strided_slice %45 {offsets = [0, 16], sizes = [8, 256], strides = [1, 1]} : vector<8x512xf32> to vector<8x256xf32>
    %71 = vector.extract_strided_slice %0 {offsets = [7, 0], sizes = [1, 256], strides = [1, 1]} : vector<9x256xf32> to vector<1x256xf32>
    %72 = vector.broadcast %71 : vector<1x256xf32> to vector<8x256xf32>
    %73 = arith.mulf %70, %72 : vector<8x256xf32>
    %74 = vector.extract_strided_slice %45 {offsets = [0, 17], sizes = [8, 256], strides = [1, 1]} : vector<8x512xf32> to vector<8x256xf32>
    %75 = vector.extract_strided_slice %0 {offsets = [8, 0], sizes = [1, 256], strides = [1, 1]} : vector<9x256xf32> to vector<1x256xf32>
    %76 = vector.broadcast %75 : vector<1x256xf32> to vector<8x256xf32>
    %77 = arith.mulf %74, %76 : vector<8x256xf32>
    %78 = tpu.concatenate %49, %53, %57, %61, %44, %65, %69, %73, %77 in 0 : vector<8x256xf32>, vector<8x256xf32>, vector<8x256xf32>, vector<8x256xf32>, vector<8x256xf32>, vector<8x256xf32>, vector<8x256xf32>, vector<8x256xf32>, vector<8x256xf32> -> vector<72x256xf32>
    %c0_9 = arith.constant 0 : index
    %c0_10 = arith.constant 0 : index
    %79 = vector.load %arg5[%c0_9, %c0_10] : memref<8x72xf32, #tpu.memory_space<vmem>>, vector<8x72xf32>
    %cst_11 = arith.constant dense<0.000000e+00> : vector<8x256xf32>
    %80 = tpu.matmul %79, %78, %cst_11 {dimension_numbers = #tpu.dot_dimension_numbers<[1], [0], [0], [1], [0, 0, 1, 1], [], []>} : vector<8x72xf32>, vector<72x256xf32>, vector<8x256xf32> -> vector<8x256xf32>
    %c0_12 = arith.constant 0 : index
    %c0_13 = arith.constant 0 : index
    %81 = vector.load %arg6[%c0_12, %c0_13] : memref<8x1xf32, #tpu.memory_space<vmem>>, vector<8x1xf32>
    %82 = vector.broadcast %81 : vector<8x1xf32> to vector<8x256xf32>
    %83 = arith.addf %80, %82 : vector<8x256xf32>
    %cst_14 = arith.constant 1.000000e-01 : f32
    %84 = vector.broadcast %cst_14 : f32 to vector<8x256xf32>
    %85 = arith.mulf %84, %83 : vector<8x256xf32>
    %86 = arith.maximumf %83, %85 : vector<8x256xf32>
    %c0_15 = arith.constant 0 : index
    %c0_16 = arith.constant 0 : index
    %c0_17 = arith.constant 0 : index
    %87 = vector.load %arg7[%c0_15, %c0_16, %c0_17] : memref<1x8x256xf32, #tpu.memory_space<vmem>>, vector<1x8x256xf32>
    %88 = vector.shape_cast %87 : vector<1x8x256xf32> to vector<8x256xf32>
    %89 = vector.shape_cast %86 : vector<8x256xf32> to vector<1x8x256xf32>
    tpu.vector_store %arg7[%c0_15, %c0_16, %c0_17], %89 {strides = array<i32>} : memref<1x8x256xf32, #tpu.memory_space<vmem>>, vector<1x8x256xf32>,
    return
  }
  func.func @transform_0(%arg0: i32) -> (i32, i32, i32) {
    %c0_i32 = arith.constant 0 : i32
    %c0_i32_0 = arith.constant 0 : i32
    %c0_i32_1 = arith.constant 0 : i32
    return %arg0, %c0_i32, %c0_i32_0 : i32, i32, i32
  }
  func.func @transform_1(%arg0: i32) -> (i32, i32) {
    %c0_i32 = arith.constant 0 : i32
    %c0_i32_0 = arith.constant 0 : i32
    %c0_i32_1 = arith.constant 0 : i32
    return %c0_i32, %c0_i32_0 : i32, i32
  }
  func.func @transform_2(%arg0: i32) -> (i32, i32) {
    %c0_i32 = arith.constant 0 : i32
    %c0_i32_0 = arith.constant 0 : i32
    %c0_i32_1 = arith.constant 0 : i32
    return %c0_i32, %c0_i32_0 : i32, i32
  }
  func.func @transform_3(%arg0: i32) -> (i32, i32) {
    %c0_i32 = arith.constant 0 : i32
    %c0_i32_0 = arith.constant 0 : i32
    %c0_i32_1 = arith.constant 0 : i32
    return %c0_i32, %c0_i32_0 : i32, i32
  }
  func.func @transform_4(%arg0: i32) -> (i32, i32) {
    %c0_i32 = arith.constant 0 : i32
    %c0_i32_0 = arith.constant 0 : i32
    %c0_i32_1 = arith.constant 0 : i32
    return %c0_i32, %c0_i32_0 : i32, i32
  }
  func.func @transform_5(%arg0: i32) -> (i32, i32) {
    %c0_i32 = arith.constant 0 : i32
    %c0_i32_0 = arith.constant 0 : i32
    %c0_i32_1 = arith.constant 0 : i32
    return %c0_i32, %c0_i32_0 : i32, i32
  }
  func.func @transform_6(%arg0: i32) -> (i32, i32, i32) {
    %c0_i32 = arith.constant 0 : i32
    %c0_i32_0 = arith.constant 0 : i32
    %c0_i32_1 = arith.constant 0 : i32
    return %arg0, %c0_i32, %c0_i32_0 : i32, i32, i32
  }
}

</mosaic_0001>

<bundles_post_ra>
// kernel: conv_block.1
= control target key start
LH: loop header
LB: loop body
LE: loop exit
PB: predicated region body
PF: predicated region fallthrough
CT: control target
= control target key end

     0   :  { %s1144_s21 = smov 0   ;;  %s1540_s0 = inlined_call_operand.vmem [shape: f32[2,8,256], index: 0, kind: input, shape index: {}]   ;;  %s1541_s1 = inlined_call_operand.vmem [shape: f32[9,256], index: 1, kind: input, shape index: {}]   ;;  %s1542_s2 = inlined_call_operand.vmem [shape: f32[8,72], index: 2, kind: input, shape index: {}]   ;;  %s1543_s3 = inlined_call_operand.vmem [shape: f32[8,1], index: 3, kind: input, shape index: {}]   ;;  %s1544_s4 = inlined_call_operand.vmem [shape: f32[8,72], index: 4, kind: input, shape index: {}]   ;;  %s1545_s5 = inlined_call_operand.vmem [shape: f32[8,1], index: 5, kind: input, shape index: {}]   ;;  %s1546_s6 = inlined_call_operand.vmem [shape: f32[2,8,256], index: 6, kind: output, shape index: {}]  }
   0x1 LB: > { %s1045_s22 = sadd.s32 4294967295, %s1092_s21   ;;  %p1049_p0 = scmp.ge.s32.totalorder %s1092_s21, 1  ;;  %s1092_s21 = sphi %s1144_s21, %s16_s21  }
   0x2   : > { %p212_p1 = scmp.lt.s32.totalorder %s1092_s21, 3 }
   0x4   : > { %p213_p2 = pnand %p1049_p0, %p212_p1 }
   0x5   : > { %s1094_s25 = smov (!%p213_p2), 17   ;;  %s1095_s8 = smov (!%p213_p2), 16  }
   0x6   : > { %216 = sbr.rel (%p213_p2) target bundleno = 1152 (0x480), region = 44  ;;  %s1096_s9 = smov (!%p213_p2), 15  }
   0x7   : > { %p242_p3 = scmp.lt.s32.totalorder (!%p213_p2), %s1045_s22, 1  ;;  %s1097_s10 = smov (!%p213_p2), 1  }
   0x8   : > { %s1098_s11 = smov (!%p213_p2), 127   ;;  %s1099_s13 = smov (!%p213_p2), 113  }
   0x9   : > { %s1100_s17 = smov (!%p213_p2), 112   ;;  %s1101_s18 = smov (!%p213_p2), 111  }
   0xa   : > { %s1102_s19 = smov (!%p213_p2), 94   ;;  %s1103_s20 = smov (!%p213_p2), 96  }
   0xb   : > { %v1054_v0 = vld [vmem:[%s1541_s1 + $0x10] ss:$0 sm:$0xff]  ;;  %v258_v1 = vlaneseq  ;;  %v1055_v2 = vld [vmem:[%s1541_s1 + $0x18] ss:$0 sm:$0xff]  ;;  %v252_v4 = vld [vmem:[%s1541_s1] sm:$0xff]  ;;  %s1548_s22 = smov (!%p242_p3, %s1045_s22), 1 }
   0xc   : > { %422 = vrot.lane.b32.xlu0 %v1054_v0, %s1094_s25  ;;  %v253_v7 = vld [vmem:[%s1541_s1 + $0x8] sm:$0xff]  ;;  %s1060_s12 = sshll.u32 %s1548_s22, 4  ;;  %vm426_vm0 = vcmask 138240   ;;  %s1104_s23 = smov 95   ;;  %vm404_vm1 = vcmask 130048   ;;  %vm382_vm2 = vcmask 121856  }
   0xd   : > { %v259_v3 = vshrl.u32 %v258_v1, 7  ;;  %s246_s16 = scalar_lea.vmem %s1540_s0, %s1060_s12  ;;  %s1105_s24 = smov 110   ;;  %vm360_vm3 = vcmask 7168   ;;  %vm338_vm4 = vcmask 1039360   ;;  %vm316_vm5 = vcmask 924672  }
   0xe   : > { %v1183_v25 = vld [vmem:[%s246_s16] sm:$0xff]  ;;  %v1189_v28 = vld [vmem:[%s246_s16 + $0x8] sm:$0xff]  ;;  %s1106_s26 = smov 126   ;;  %vm294_vm6 = vcmask 916480   ;;  %vm272_vm7 = vcmask 908288   ;;  %vm520_vm8 = vcmask 769024  }
   0xf   : > { %v392_v5 = vsub.s32 7, %v259_v3  ;;  %v370_v6 = vsub.s32 6, %v259_v3  ;;  %v348_v8 = vsub.s32 5, %v259_v3  ;;  %v326_v13 = vsub.s32 3, %v259_v3 }
  0x10   : > { %424 = vrot.lane.b32.xlu0 %v1055_v2, %s1094_s25  ;;  %v304_v16 = vsub.s32 2, %v259_v3  ;;  %v282_v19 = vsub.s32 1, %v259_v3  ;;  %v260_v22 = vsub.s32 0, %v259_v3  ;;  %vm508_vm9 = vcmask 777216  }
  0x11   : > { %v393_v9 = vrot.slane %v252_v4, %v392_v5  ;;  %v371_v10 = vrot.slane %v252_v4, %v370_v6  ;;  %v397_v11 = vrot.slane %v253_v7, %v392_v5  ;;  %v349_v12 = vrot.slane %v252_v4, %v348_v8 }
  0x12   : > { %v375_v14 = vrot.slane %v253_v7, %v370_v6  ;;  %v327_v15 = vrot.slane %v252_v4, %v326_v13  ;;  %v353_v17 = vrot.slane %v253_v7, %v348_v8  ;;  %v305_v18 = vrot.slane %v252_v4, %v304_v16 }
  0x13   : > { %400 = vrot.lane.b32.xlu1 %v393_v9, %s1095_s8  ;;  %v331_v20 = vrot.slane %v253_v7, %v326_v13  ;;  %v283_v21 = vrot.slane %v252_v4, %v282_v19  ;;  %v309_v23 = vrot.slane %v253_v7, %v304_v16  ;;  %v1181_v24 = vrot.slane %v253_v7, %v260_v22 }
  0x14   : > { %378 = vrot.lane.b32.xlu0 %v371_v10, %s1096_s9  ;;  %v287_v26 = vrot.slane %v253_v7, %v282_v19  ;;  %v261_v27 = vrot.slane %v252_v4, %v260_v22  ;;  %vm496_vm10 = vcmask 785408   ;;  %vm484_vm11 = vcmask 900096  }
  0x15   : > { %vm454_vm12 = vcmask 1031168   ;;  %vm623_vm13 = vcmask 588800  }
  0x17   : > { %402 = vrot.lane.b32.xlu1 %v397_v11, %s1095_s8 }
  0x18   : > { %356 = vrot.lane.b32.xlu0 %v349_v12, %s1097_s10 }
  0x1b   : > { %380 = vrot.lane.b32.xlu1 %v375_v14, %s1096_s9 }
  0x1c   : > { %334 = vrot.lane.b32.xlu0 %v327_v15, %s1098_s11 }
  0x1f   : > { %358 = vrot.lane.b32.xlu1 %v353_v17, %s1097_s10 }
  0x20   : > { %312 = vrot.lane.b32.xlu0 %v305_v18, %s1099_s13 }
  0x23   : > { %336 = vrot.lane.b32.xlu1 %v331_v20, %s1098_s11 }
  0x24   : > { %290 = vrot.lane.b32.xlu0 %v283_v21, %s1100_s17 }
  0x27   : > { %314 = vrot.lane.b32.xlu1 %v309_v23, %s1099_s13  ;;  %s251_s13 = scalar_lea.vmem %s1546_s6, %s1060_s12 }
  0x28   : > { %470 = vrot.lane.b32.xlu0 %v1183_v25, %s1101_s18 }
  0x2b   : > { %292 = vrot.lane.b32.xlu1 %v287_v26, %s1100_s17 }
  0x2c   : > { %268 = vrot.lane.b32.xlu0 %v261_v27, %s1101_s18 }
  0x2f   : > { %472 = vrot.lane.b32.xlu1 %v1189_v28, %s1101_s18 }
  0x7e   : > { %v1193_v29 = vpop.permute.xlu0 %422 }
  0x7f   : > { %v431_v30 = vmul.f32 %v1193_v29, %v1183_v25 }
  0x81   : > { %514 = vrot.lane.b32.xlu0 %v431_v30, %s1102_s19 }
  0x82   : > { %v1198_v31 = vpop.permute.xlu0 %424 }
  0x83   : > { %v433_v32 = vmul.f32 %v1198_v31, %v1183_v25  ;;  %v1205_v33 = vsel %vm426_vm0, %v1193_v29, %v1198_v31 }
  0x84   : > { %v432_v34 = vmul.f32 %v1205_v33, %v1189_v28 }
  0x85   : > { %v1209_v35 = vpop.permute.xlu1 %400  ;;  %518 = vrot.lane.b32.xlu0 %v433_v32, %s1102_s19 }
  0x86   : > { %516 = vrot.lane.b32.xlu1 %v432_v34, %s1102_s19  ;;  %v409_v36 = vmul.f32 %v1209_v35, %v1183_v25  ;;  %v1215_v37 = vpop.permute.xlu0 %378 }
  0x87   : > { %v387_v38 = vmul.f32 %v1215_v37, %v1183_v25 }
  0x89   : > { %v1219_v39 = vpop.permute.xlu1 %402  ;;  %490 = vrot.lane.b32.xlu0 %v387_v38, %s1103_s20 }
  0x8a   : > { %502 = vrot.lane.b32.xlu1 %v409_v36, %s1104_s23  ;;  %v411_v40 = vmul.f32 %v1219_v39, %v1183_v25  ;;  %v1225_v41 = vpop.permute.xlu0 %356  ;;  %v1261_v55 = vsel %vm404_vm1, %v1209_v35, %v1219_v39 }
  0x8b   : > { %v365_v44 = vmul.f32 %v1225_v41, %v1183_v25  ;;  %v410_v57 = vmul.f32 %v1261_v55, %v1189_v28 }
  0x8d   : > { %v1227_v42 = vpop.permute.xlu1 %380 }
  0x8e   : > { %506 = vrot.lane.b32.xlu1 %v411_v40, %s1104_s23  ;;  %v389_v43 = vmul.f32 %v1227_v42, %v1183_v25  ;;  %v1234_v45 = vpop.permute.xlu0 %334  ;;  %v1266_v56 = vsel %vm382_vm2, %v1215_v37, %v1227_v42 }
  0x8f   : > { %v343_v46 = vmul.f32 %v1234_v45, %v1189_v28  ;;  %v388_v59 = vmul.f32 %v1266_v56, %v1189_v28 }
  0x90   : > { %494 = vrot.lane.b32.xlu0 %v389_v43, %s1103_s20 }
  0x91   : > { %v1239_v47 = vpop.permute.xlu1 %358 }
  0x92   : > { %478 = vrot.lane.b32.xlu1 %v365_v44, %s1105_s24  ;;  %v367_v48 = vmul.f32 %v1239_v47, %v1183_v25  ;;  %v1250_v51 = vpop.permute.xlu0 %312  ;;  %v1273_v58 = vsel %vm360_vm3, %v1225_v41, %v1239_v47 }
  0x93   : > { %v321_v54 = vmul.f32 %v1250_v51, %v1189_v28  ;;  %v366_v60 = vmul.f32 %v1273_v58, %v1189_v28 }
  0x94   : > { %460 = vrot.lane.b32.xlu0 %v343_v46, %s1100_s17 }
  0x95   : > { %v1245_v49 = vpop.permute.xlu1 %336 }
  0x96   : > { %482 = vrot.lane.b32.xlu1 %v367_v48, %s1105_s24  ;;  %v345_v50 = vmul.f32 %v1245_v49, %v1189_v28  ;;  %v1283_v62 = vpop.permute.xlu0 %290  ;;  %v1288_v63 = vsel %vm338_vm4, %v1234_v45, %v1245_v49 }
  0x97   : > { %v344_v2 = vmul.f32 %v1288_v63, %v1183_v25  ;;  %v299_v6 = vmul.f32 %v1283_v62, %v1189_v28 }
  0x99   : > { %v1252_v52 = vpop.permute.xlu1 %314 }
  0x9a   : > { %464 = vrot.lane.b32.xlu1 %v345_v50, %s1100_s17  ;;  %v323_v53 = vmul.f32 %v1252_v52, %v1189_v28  ;;  %v1293_v0 = vsel %vm316_vm5, %v1250_v51, %v1252_v52  ;;  %v471_v8 = vpop.permute.xlu0 %470 }
  0x9b   : > { %v322_v3 = vmul.f32 %v1293_v0, %v1183_v25 }
  0x9c   : > { %452 = vrot.lane.b32.xlu0 %v323_v53, %s1106_s26 }
  0x9d   : > { %v1281_v61 = vpop.permute.xlu1 %292 }
  0x9e   : > { %448 = vrot.lane.b32.xlu1 %v321_v54, %s1106_s26  ;;  %v1298_v1 = vsel %vm294_vm6, %v1283_v62, %v1281_v61  ;;  %v301_v5 = vmul.f32 %v1281_v61, %v1189_v28  ;;  %v1321_v10 = vpop.permute.xlu0 %268 }
  0x9f   : > { %v300_v4 = vmul.f32 %v1298_v1, %v1183_v25 }
  0xa0   : > { %504 = vrot.lane.b32.xlu0 %v410_v57, %s1104_s23 }
  0xa1   : > { %v473_v7 = vpop.permute.xlu1 %472 }
  0xa2   : > { %492 = vrot.lane.b32.xlu1 %v388_v59, %s1103_s20  ;;  %v474_v9 = vsel %vm272_vm7, %v471_v8, %v473_v7 }
  0xa4   : > { %480 = vrot.lane.b32.xlu0 %v366_v60, %s1105_s24 }
  0xa6   : > { %270 = vrot.lane.b32.xlu1 %v1181_v24, %s1101_s18 }
  0xa8   : > { %462 = vrot.lane.b32.xlu0 %v344_v2, %s1100_s17 }
  0xaa   : > { %450 = vrot.lane.b32.xlu1 %v322_v3, %s1106_s26 }
  0xac   : > { %439 = vrot.lane.b32.xlu0 %v300_v4, %s1098_s11 }
  0xae   : > { %441 = vrot.lane.b32.xlu1 %v301_v5, %s1098_s11 }
  0xb0   : > { %437 = vrot.lane.b32.xlu0 %v299_v6, %s1098_s11  ;;  %v1107_v6 = vmov 0.0  }
  0xb1   : > { %691 = vmatprep.mubr.f32.mxu0 %v1107_v6  ;;  %977 = vmatprep.mubr.f32.mxu1 %v1107_v6 }
  0xb2   : > { %559 = vrot.lane.b32.xlu1 %v474_v9, %s1094_s25 }
  0xb4   : > { %561 = vrot.lane.b32.xlu0 %v473_v7, %s1094_s25  ;;  %v524_v7 = vld [vmem:[%s1543_s3] sm:$0xff] }
  0xb6   : > { %557 = vrot.lane.b32.xlu1 %v471_v8, %s1094_s25  ;;  %v1108_v8 = vmov 0  }
  0xb7   : > { %1085 = vset.pattern.permute.xlu0 %v1108_v8 }
  0xf3   : > { %v515_v11 = vpop.permute.xlu0 %514 }
  0xf7   : > { %v519_v12 = vpop.permute.xlu0 %518 }
  0xf8   : > { %v517_v13 = vpop.permute.xlu1 %516 }
  0xf9   : > { %v522_v14 = vsel %vm520_vm8, %v517_v13, %v519_v12  ;;  %v521_v54 = vsel %vm520_vm8, %v515_v11, %v517_v13  ;;  %v277_v12 = vmul.f32 %v1321_v10, %v1189_v28 }
  0xfa   : > { %585 = vrot.lane.b32.xlu0 %v522_v14, %s1094_s25 }
  0xfb   : > { %v491_v16 = vpop.permute.xlu0 %490 }
  0xfc   : > { %v503_v15 = vpop.permute.xlu1 %502 }
  0xfe   : > { %575 = vrot.lane.b32.xlu0 %v503_v15, %s1094_s25 }
 0x100   : > { %v507_v17 = vpop.permute.xlu1 %506 }
 0x102   : > { %v495_v18 = vpop.permute.xlu0 %494 }
 0x104   : > { %v479_v19 = vpop.permute.xlu1 %478 }
 0x105   : > { %563 = vrot.lane.b32.xlu0 %v479_v19, %s1094_s25 }
 0x106   : > { %v461_v21 = vpop.permute.xlu0 %460 }
 0x108   : > { %v483_v20 = vpop.permute.xlu1 %482 }
 0x10c   : > { %v465_v22 = vpop.permute.xlu1 %464 }
 0x10e   : > { %v453_v23 = vpop.permute.xlu0 %452 }
 0x10f   : > { %549 = vrot.lane.b32.xlu0 %v453_v23, %s1094_s25 }
 0x110   : > { %v449_v24 = vpop.permute.xlu1 %448 }
 0x112   : > { %v505_v26 = vpop.permute.xlu0 %504 }
 0x113   : > { %v509_v27 = vsel %vm508_vm9, %v503_v15, %v505_v26  ;;  %v510_v3 = vsel %vm508_vm9, %v505_v26, %v507_v17 }
 0x114   : > { %v493_v30 = vpop.permute.xlu1 %492  ;;  %577 = vrot.lane.b32.xlu0 %v509_v27, %s1094_s25 }
 0x115   : > { %v498_v34 = vsel %vm496_vm10, %v493_v30, %v495_v18  ;;  %v497_v4 = vsel %vm496_vm10, %v491_v16, %v493_v30 }
 0x116   : > { %v481_v32 = vpop.permute.xlu0 %480 }
 0x117   : > { %v485_v43 = vsel %vm484_vm11, %v479_v19, %v481_v32  ;;  %v486_v5 = vsel %vm484_vm11, %v481_v32, %v483_v20 }
 0x118   : > { %v1331_v36 = vpop.permute.xlu1 %270  ;;  %573 = vrot.lane.b32.xlu0 %v498_v34, %s1094_s25 }
 0x119   : > { %v1337_v38 = vsel %vm272_vm7, %v1321_v10, %v1331_v36  ;;  %v279_v2 = vmul.f32 %v1331_v36, %v1189_v28 }
 0x11a   : > { %v278_v40 = vmul.f32 %v1337_v38, %v1183_v25  ;;  %v463_v44 = vpop.permute.xlu0 %462 }
 0x11b   : > { %v467_v48 = vsel %vm294_vm6, %v463_v44, %v465_v22  ;;  %v466_v25 = vsel %vm294_vm6, %v461_v21, %v463_v44 }
 0x11c   : > { %535 = vrot.lane.b32.xlu1 %v278_v40, %s1094_s25  ;;  %565 = vrot.lane.b32.xlu0 %v485_v43, %s1094_s25  ;;  %v451_v46 = vpop.permute.xlu1 %450 }
 0x11d   : > { %v456_v9 = vsel %vm454_vm12, %v451_v46, %v453_v23 }
 0x11e   : > { %v440_v50 = vpop.permute.xlu0 %439 }
 0x120   : > { %581 = vrot.lane.b32.xlu1 %v515_v11, %s1094_s25  ;;  %553 = vrot.lane.b32.xlu0 %v467_v48, %s1094_s25  ;;  %v442_v53 = vpop.permute.xlu1 %441  ;;  %v455_v11 = vsel %vm454_vm12, %v449_v24, %v451_v46 }
 0x121   : > { %v444_v57 = vsel %vm338_vm4, %v440_v50, %v442_v53 }
 0x122   : > { %v438_v59 = vpop.permute.xlu0 %437 }
 0x123   : > { %v443_v60 = vsel %vm338_vm4, %v438_v59, %v440_v50 }
 0x124   : > { %583 = vrot.lane.b32.xlu1 %v521_v54, %s1094_s25  ;;  %551 = vrot.lane.b32.xlu0 %v466_v25, %s1094_s25  ;;  %v560_v17 = vpop.permute.xlu1 %559 }
 0x126   : > { %v562_v13 = vpop.permute.xlu0 %561 }
 0x128   : > { %569 = vrot.lane.b32.xlu1 %v491_v16, %s1094_s25  ;;  %541 = vrot.lane.b32.xlu0 %v444_v57, %s1094_s25  ;;  %v558_v19 = vpop.permute.xlu1 %557 }
 0x12c   : > { %555 = vrot.lane.b32.xlu1 %v465_v22, %s1094_s25  ;;  %539 = vrot.lane.b32.xlu0 %v443_v60, %s1094_s25 }
 0x130   : > { %543 = vrot.lane.b32.xlu1 %v442_v53, %s1094_s25  ;;  %537 = vrot.lane.b32.xlu0 %v279_v2, %s1094_s25 }
 0x134   : > { %579 = vrot.lane.b32.xlu1 %v510_v3, %s1094_s25  ;;  %527 = vperm.xlu0 %1085, %v524_v7   ;;  %v596_v3 = vsel %vm426_vm0, %v560_v17, %v562_v13 }
 0x138   : > { %571 = vrot.lane.b32.xlu1 %v497_v4, %s1094_s25 }
 0x13c   : > { %567 = vrot.lane.b32.xlu1 %v486_v5, %s1094_s25  ;;  %v595_v5 = vsel %vm426_vm0, %v558_v19, %v560_v17  ;;  %v523_v17 = vld [vmem:[%s1542_s2] sm:$0xff] }
 0x140   : > { %547 = vrot.lane.b32.xlu1 %v456_v9, %s1094_s25 }
 0x144   : > { %545 = vrot.lane.b32.xlu1 %v455_v11, %s1094_s25 }
 0x148   : > { %533 = vrot.lane.b32.xlu1 %v277_v12, %s1094_s25 }
 0x16c   : > { %v586_v14 = vpop.permute.xlu0 %585 }
 0x170   : > { %v576_v15 = vpop.permute.xlu0 %575 }
 0x177   : > { %v564_v16 = vpop.permute.xlu0 %563 }
 0x181   : > { %v550_v18 = vpop.permute.xlu0 %549 }
 0x186   : > { %v578_v20 = vpop.permute.xlu0 %577 }
 0x187   : > { %v601_v48 = vsel %vm426_vm0, %v576_v15, %v578_v20 }
 0x18a   : > { %v574_v23 = vpop.permute.xlu0 %573 }
 0x18e   : > { %v536_v21 = vpop.permute.xlu1 %535  ;;  %v566_v28 = vpop.permute.xlu0 %565 }
 0x18f   : > { %v597_v60 = vsel %vm426_vm0, %v564_v16, %v566_v28 }
 0x192   : > { %v582_v22 = vpop.permute.xlu1 %581  ;;  %v554_v34 = vpop.permute.xlu0 %553 }
 0x196   : > { %v584_v26 = vpop.permute.xlu1 %583  ;;  %v552_v43 = vpop.permute.xlu0 %551 }
 0x197   : > { %v604_v24 = vsel %vm426_vm0, %v584_v26, %v586_v14  ;;  %v603_v27 = vsel %vm426_vm0, %v582_v22, %v584_v26  ;;  %v593_v7 = vsel %vm426_vm0, %v552_v43, %v554_v34 }
 0x198   : > { %641 = vmatprep.subr.mxu0 %v604_v24 }
 0x199   : > { %642 = vmatpush1.msra.mxu0 %v603_v27 }
 0x19a   : > { %v570_v30 = vpop.permute.xlu1 %569  ;;  %v542_v53 = vpop.permute.xlu0 %541 }
 0x19e   : > { %v556_v32 = vpop.permute.xlu1 %555  ;;  %v540_v2 = vpop.permute.xlu0 %539 }
 0x19f   : > { %v594_v6 = vsel %vm426_vm0, %v554_v34, %v556_v32  ;;  %v589_v14 = vsel %vm426_vm0, %v540_v2, %v542_v53 }
 0x1a2   : > { %v544_v40 = vpop.permute.xlu1 %543  ;;  %v538_v11 = vpop.permute.xlu0 %537 }
 0x1a3   : > { %v590_v13 = vsel %vm426_vm0, %v542_v53, %v544_v40  ;;  %v588_v16 = vsel %vm426_vm0, %v536_v21, %v538_v11 }
 0x1a6   : > { %v580_v44 = vpop.permute.xlu1 %579 }
 0x1a7   : > { %v602_v46 = vsel %vm426_vm0, %v578_v20, %v580_v44 }
 0x1a8   : > { %643 = vmatprep.subr.mxu0 %v602_v46 }
 0x1a9   : > { %644 = vmatpush1.msra.mxu0 %v601_v48 }
 0x1aa   : > { %v572_v50 = vpop.permute.xlu1 %571 }
 0x1ab   : > { %v600_v54 = vsel %vm426_vm0, %v572_v50, %v574_v23  ;;  %v599_v25 = vsel %vm426_vm0, %v570_v30, %v572_v50 }
 0x1ac   : > { %645 = vmatprep.subr.mxu0 %v600_v54 }
 0x1ad   : > { %646 = vmatpush1.msra.mxu0 %v599_v25 }
 0x1ae   : > { %v568_v57 = vpop.permute.xlu1 %567 }
 0x1af   : > { %v598_v59 = vsel %vm426_vm0, %v566_v28, %v568_v57  ;;  %v528_v19 = vpop.permute.xlu0 %527 }
 0x1b0   : > { %647 = vmatprep.subr.mxu0 %v598_v59 }
 0x1b1   : > { %648 = vmatpush1.msra.mxu0 %v597_v60 }
 0x1b2   : > { %v548_v4 = vpop.permute.xlu1 %547  ;;  %649 = vmatprep.subr.mxu0 %v596_v3 }
 0x1b3   : > { %650 = vmatpush1.msra.mxu0 %v595_v5  ;;  %v592_v8 = vsel %vm426_vm0, %v548_v4, %v550_v18 }
 0x1b4   : > { %651 = vmatprep.subr.mxu0 %v594_v6 }
 0x1b5   : > { %652 = vmatpush1.msra.mxu0 %v593_v7 }
 0x1b6   : > { %v546_v9 = vpop.permute.xlu1 %545  ;;  %653 = vmatprep.subr.mxu0 %v592_v8 }
 0x1b7   : > { %v591_v12 = vsel %vm426_vm0, %v546_v9, %v548_v4 }
 0x1b8   : > { %654 = vmatpush1.msra.mxu0 %v591_v12 }
 0x1b9   : > { %655 = vmatprep.subr.mxu0 %v590_v13 }
 0x1ba   : > { %v534_v15 = vpop.permute.xlu1 %533  ;;  %656 = vmatpush1.msra.mxu0 %v589_v14 }
 0x1bb   : > { %657 = vmatprep.subr.mxu0 %v588_v16  ;;  %v587_v18 = vsel %vm426_vm0, %v534_v15, %v536_v21 }
 0x1bc   : > { %658 = vmatpush1.msra.mxu0 %v587_v18 }
 0x1bd   : > { %1056 = vmatmul.mubr.msk.f32.vlgmr.msra.gmra.mxu0 %vm623_vm13, %v523_v17 }
 0x27d   : > { %v693_v20 = vpop.f32.mrf.mxu0 }
 0x27e   : > { %v694_v22 = vadd.f32 %v693_v20, %v528_v19 }
 0x27f   : > { %v695_v30 = vpop.f32.mrf.mxu0 }
 0x280   : > { %v698_v23 = vmul.f32 0.1, %v694_v22  ;;  %v696_v34 = vadd.f32 %v695_v30, %v528_v19  ;;  %v811_v30 = vld [vmem:[%s1545_s5] sm:$0xff] }
 0x282   : > { %v700_v26 = vmax.f32 %v694_v22, %v698_v23  ;;  %v699_v40 = vmul.f32 0.1, %v696_v34 }
 0x284   : > { %761 = vrot.lane.b32.xlu0 %v700_v26, %s1101_s18  ;;  %v723_v24 = vmul.f32 %v700_v26, %v1193_v29  ;;  %v725_v27 = vmul.f32 %v700_v26, %v1198_v31  ;;  %v720_v21 = vmul.f32 %v700_v26, %v1209_v35  ;;  %v717_v28 = vmul.f32 %v700_v26, %v1215_v37 }
 0x285   : > { %v722_v32 = vmul.f32 %v700_v26, %v1219_v39  ;;  %v719_v29 = vmul.f32 %v700_v26, %v1227_v42  ;;  %v714_v31 = vmul.f32 %v700_v26, %v1225_v41  ;;  %v712_v35 = vmul.f32 %v700_v26, %v1288_v63 }
 0x286   : > { %802 = vrot.lane.b32.xlu1 %v723_v24, %s1102_s19  ;;  %v716_v37 = vmul.f32 %v700_v26, %v1239_v47  ;;  %v1417_v43 = vmax.f32 %v696_v34, %v699_v40  ;;  %v706_v39 = vmul.f32 %v700_v26, %v1298_v1  ;;  %v709_v42 = vmul.f32 %v700_v26, %v1293_v0 }
 0x287   : > { %v703_v0 = vmul.f32 %v700_v26, %v1337_v38 }
 0x288   : > { %806 = vrot.lane.b32.xlu0 %v725_v27, %s1102_s19  ;;  %v721_v41 = vmul.f32 %v1417_v43, %v1261_v55  ;;  %v715_v47 = vmul.f32 %v1417_v43, %v1273_v58  ;;  %v724_v63 = vmul.f32 %v1417_v43, %v1205_v33  ;;  %v711_v1 = vmul.f32 %v1417_v43, %v1234_v45 }
 0x289   : > { %v718_v55 = vmul.f32 %v1417_v43, %v1266_v56  ;;  %v710_v58 = vmul.f32 %v1417_v43, %v1252_v52  ;;  %v713_v33 = vmul.f32 %v1417_v43, %v1245_v49  ;;  %v705_v45 = vmul.f32 %v1417_v43, %v1283_v62 }
 0x28a   : > { %791 = vrot.lane.b32.xlu1 %v720_v21, %s1104_s23  ;;  %v708_v56 = vmul.f32 %v1417_v43, %v1250_v51  ;;  %v707_v52 = vmul.f32 %v1417_v43, %v1281_v61  ;;  %v704_v21 = vmul.f32 %v1417_v43, %v1331_v36 }
 0x28c   : > { %780 = vrot.lane.b32.xlu0 %v717_v28, %s1103_s20  ;;  %v702_v28 = vmul.f32 %v1417_v43, %v1321_v10 }
 0x28e   : > { %795 = vrot.lane.b32.xlu1 %v722_v32, %s1104_s23 }
 0x290   : > { %784 = vrot.lane.b32.xlu0 %v719_v29, %s1103_s20 }
 0x292   : > { %769 = vrot.lane.b32.xlu1 %v714_v31, %s1105_s24 }
 0x294   : > { %753 = vrot.lane.b32.xlu0 %v712_v35, %s1100_s17 }
 0x296   : > { %773 = vrot.lane.b32.xlu1 %v716_v37, %s1105_s24 }
 0x298   : > { %731 = vrot.lane.b32.xlu0 %v706_v39, %s1098_s11 }
 0x29a   : > { %763 = vrot.lane.b32.xlu1 %v1417_v43, %s1101_s18 }
 0x29c   : > { %793 = vrot.lane.b32.xlu0 %v721_v41, %s1104_s23 }
 0x29e   : > { %742 = vrot.lane.b32.xlu1 %v709_v42, %s1106_s26 }
 0x2a0   : > { %771 = vrot.lane.b32.xlu0 %v715_v47, %s1105_s24 }
 0x2a2   : > { %804 = vrot.lane.b32.xlu1 %v724_v63, %s1102_s19 }
 0x2a4   : > { %751 = vrot.lane.b32.xlu0 %v711_v1, %s1100_s17 }
 0x2a6   : > { %782 = vrot.lane.b32.xlu1 %v718_v55, %s1103_s20 }
 0x2a8   : > { %744 = vrot.lane.b32.xlu0 %v710_v58, %s1106_s26 }
 0x2aa   : > { %755 = vrot.lane.b32.xlu1 %v713_v33, %s1100_s17 }
 0x2ac   : > { %729 = vrot.lane.b32.xlu0 %v705_v45, %s1098_s11 }
 0x2ae   : > { %740 = vrot.lane.b32.xlu1 %v708_v56, %s1106_s26 }
 0x2b2   : > { %733 = vrot.lane.b32.xlu1 %v707_v52, %s1098_s11 }
 0x2b6   : > { %822 = vrot.lane.b32.xlu1 %v703_v0, %s1094_s25 }
 0x2f6   : > { %v762_v49 = vpop.permute.xlu0 %761 }
 0x2f7   : > { %844 = vrot.lane.b32.xlu1 %v762_v49, %s1094_s25 }
 0x2f8   : > { %v803_v62 = vpop.permute.xlu1 %802 }
 0x2fa   : > { %v807_v44 = vpop.permute.xlu0 %806 }
 0x2fb   : > { %868 = vrot.lane.b32.xlu1 %v803_v62, %s1094_s25 }
 0x2fc   : > { %v792_v46 = vpop.permute.xlu1 %791 }
 0x2fd   : > { %862 = vrot.lane.b32.xlu0 %v792_v46, %s1094_s25 }
 0x2fe   : > { %v781_v51 = vpop.permute.xlu0 %780 }
 0x2ff   : > { %856 = vrot.lane.b32.xlu1 %v781_v51, %s1094_s25 }
 0x300   : > { %v796_v61 = vpop.permute.xlu1 %795 }
 0x302   : > { %v785_v48 = vpop.permute.xlu0 %784 }
 0x304   : > { %v770_v50 = vpop.permute.xlu1 %769 }
 0x305   : > { %850 = vrot.lane.b32.xlu0 %v770_v50, %s1094_s25 }
 0x306   : > { %v754_v38 = vpop.permute.xlu0 %753 }
 0x308   : > { %v774_v53 = vpop.permute.xlu1 %773 }
 0x30a   : > { %v732_v54 = vpop.permute.xlu0 %731 }
 0x30c   : > { %v764_v25 = vpop.permute.xlu1 %763 }
 0x30d   : > { %v765_v57 = vsel %vm272_vm7, %v762_v49, %v764_v25  ;;  %848 = vrot.lane.b32.xlu0 %v764_v25, %s1094_s25 }
 0x30e   : > { %v794_v59 = vpop.permute.xlu0 %793  ;;  %846 = vrot.lane.b32.xlu1 %v765_v57, %s1094_s25 }
 0x30f   : > { %v797_v11 = vsel %vm508_vm9, %v792_v46, %v794_v59  ;;  %v798_v16 = vsel %vm508_vm9, %v794_v59, %v796_v61 }
 0x310   : > { %v743_v60 = vpop.permute.xlu1 %742 }
 0x312   : > { %v772_v2 = vpop.permute.xlu0 %771 }
 0x313   : > { %v775_v15 = vsel %vm484_vm11, %v770_v50, %v772_v2  ;;  %v776_v20 = vsel %vm484_vm11, %v772_v2, %v774_v53 }
 0x314   : > { %v805_v3 = vpop.permute.xlu1 %804 }
 0x315   : > { %v809_v8 = vsel %vm520_vm8, %v805_v3, %v807_v44  ;;  %v808_v14 = vsel %vm520_vm8, %v803_v62, %v805_v3 }
 0x316   : > { %v752_v4 = vpop.permute.xlu0 %751 }
 0x317   : > { %v757_v19 = vsel %vm294_vm6, %v752_v4, %v754_v38 }
 0x318   : > { %v783_v5 = vpop.permute.xlu1 %782 }
 0x319   : > { %v787_v13 = vsel %vm496_vm10, %v783_v5, %v785_v48  ;;  %v786_v18 = vsel %vm496_vm10, %v781_v51, %v783_v5 }
 0x31a   : > { %v745_v6 = vpop.permute.xlu0 %744 }
 0x31b   : > { %836 = vrot.lane.b32.xlu0 %v745_v6, %s1094_s25  ;;  %v747_v26 = vsel %vm454_vm12, %v743_v60, %v745_v6 }
 0x31c   : > { %v756_v7 = vpop.permute.xlu1 %755 }
 0x31d   : > { %842 = vrot.lane.b32.xlu1 %v756_v7, %s1094_s25  ;;  %v758_v17 = vsel %vm294_vm6, %v754_v38, %v756_v7 }
 0x31e   : > { %v730_v23 = vpop.permute.xlu0 %729 }
 0x31f   : > { %872 = vrot.lane.b32.xlu0 %v809_v8, %s1094_s25  ;;  %v735_v24 = vsel %vm338_vm4, %v730_v23, %v732_v54  ;;  %v810_v8 = vld [vmem:[%s1544_s4] sm:$0xff] }
 0x320   : > { %v741_v9 = vpop.permute.xlu1 %740 }
 0x321   : > { %v746_v27 = vsel %vm454_vm12, %v741_v9, %v743_v60 }
 0x323   : > { %864 = vrot.lane.b32.xlu0 %v797_v11, %s1094_s25 }
 0x324   : > { %v734_v12 = vpop.permute.xlu1 %733 }
 0x325   : > { %830 = vrot.lane.b32.xlu1 %v734_v12, %s1094_s25  ;;  %v736_v22 = vsel %vm338_vm4, %v732_v54, %v734_v12 }
 0x327   : > { %860 = vrot.lane.b32.xlu0 %v787_v13, %s1094_s25 }
 0x328   : > { %v1506_v32 = vpop.permute.xlu1 %822 }
 0x329   : > { %870 = vrot.lane.b32.xlu1 %v808_v14, %s1094_s25 }
 0x32b   : > { %852 = vrot.lane.b32.xlu0 %v775_v15, %s1094_s25 }
 0x32d   : > { %866 = vrot.lane.b32.xlu1 %v798_v16, %s1094_s25 }
 0x32f   : > { %840 = vrot.lane.b32.xlu0 %v758_v17, %s1094_s25 }
 0x331   : > { %858 = vrot.lane.b32.xlu1 %v786_v18, %s1094_s25 }
 0x333   : > { %838 = vrot.lane.b32.xlu0 %v757_v19, %s1094_s25 }
 0x335   : > { %854 = vrot.lane.b32.xlu1 %v776_v20, %s1094_s25 }
 0x337   : > { %828 = vrot.lane.b32.xlu0 %v736_v22, %s1094_s25 }
 0x339   : > { %834 = vrot.lane.b32.xlu1 %v747_v26, %s1094_s25 }
 0x33b   : > { %826 = vrot.lane.b32.xlu0 %v735_v24, %s1094_s25 }
 0x33d   : > { %832 = vrot.lane.b32.xlu1 %v746_v27, %s1094_s25 }
 0x33f   : > { %824 = vrot.lane.b32.xlu0 %v704_v21, %s1094_s25 }
 0x341   : > { %820 = vrot.lane.b32.xlu1 %v702_v28, %s1094_s25 }
 0x343   : > { %814 = vperm.xlu0 %1085, %v811_v30  }
 0x369   : > { %v845_v34 = vpop.permute.xlu1 %844 }
 0x36d   : > { %v869_v31 = vpop.permute.xlu1 %868 }
 0x36f   : > { %v863_v29 = vpop.permute.xlu0 %862 }
 0x371   : > { %v857_v36 = vpop.permute.xlu1 %856 }
 0x377   : > { %v851_v40 = vpop.permute.xlu0 %850 }
 0x37f   : > { %v849_v35 = vpop.permute.xlu0 %848 }
 0x380   : > { %v847_v39 = vpop.permute.xlu1 %846 }
 0x381   : > { %v883_v50 = vsel %vm426_vm0, %v847_v39, %v849_v35  ;;  %v882_v53 = vsel %vm426_vm0, %v845_v34, %v847_v39 }
 0x38d   : > { %v837_v37 = vpop.permute.xlu0 %836 }
 0x38f   : > { %v843_v42 = vpop.permute.xlu1 %842 }
 0x391   : > { %v873_v41 = vpop.permute.xlu0 %872 }
 0x395   : > { %v865_v10 = vpop.permute.xlu0 %864 }
 0x396   : > { %v888_v52 = vsel %vm426_vm0, %v863_v29, %v865_v10 }
 0x397   : > { %v831_v43 = vpop.permute.xlu1 %830 }
 0x399   : > { %v861_v47 = vpop.permute.xlu0 %860 }
 0x39b   : > { %v871_v63 = vpop.permute.xlu1 %870 }
 0x39c   : > { %v891_v1 = vsel %vm426_vm0, %v871_v63, %v873_v41  ;;  %v890_v55 = vsel %vm426_vm0, %v869_v31, %v871_v63 }
 0x39d   : > { %v853_v58 = vpop.permute.xlu0 %852  ;;  %927 = vmatprep.subr.mxu1 %v891_v1 }
 0x39e   : > { %928 = vmatpush1.msra.mxu1 %v890_v55  ;;  %v884_v48 = vsel %vm426_vm0, %v851_v40, %v853_v58 }
 0x39f   : > { %v867_v33 = vpop.permute.xlu1 %866 }
 0x3a0   : > { %v889_v45 = vsel %vm426_vm0, %v865_v10, %v867_v33 }
 0x3a1   : > { %v841_v56 = vpop.permute.xlu0 %840  ;;  %929 = vmatprep.subr.mxu1 %v889_v45 }
 0x3a2   : > { %930 = vmatpush1.msra.mxu1 %v888_v52  ;;  %v881_v54 = vsel %vm426_vm0, %v841_v56, %v843_v42 }
 0x3a3   : > { %v859_v0 = vpop.permute.xlu1 %858 }
 0x3a4   : > { %v887_v49 = vsel %vm426_vm0, %v859_v0, %v861_v47  ;;  %v886_v62 = vsel %vm426_vm0, %v857_v36, %v859_v0 }
 0x3a5   : > { %v839_v44 = vpop.permute.xlu0 %838  ;;  %931 = vmatprep.subr.mxu1 %v887_v49 }
 0x3a6   : > { %932 = vmatpush1.msra.mxu1 %v886_v62  ;;  %v880_v57 = vsel %vm426_vm0, %v839_v44, %v841_v56 }
 0x3a7   : > { %v855_v46 = vpop.permute.xlu1 %854 }
 0x3a8   : > { %v885_v51 = vsel %vm426_vm0, %v853_v58, %v855_v46 }
 0x3a9   : > { %v829_v61 = vpop.permute.xlu0 %828  ;;  %933 = vmatprep.subr.mxu1 %v885_v51 }
 0x3aa   : > { %934 = vmatpush1.msra.mxu1 %v884_v48  ;;  %v877_v4 = vsel %vm426_vm0, %v829_v61, %v831_v43 }
 0x3ab   : > { %935 = vmatprep.subr.mxu1 %v883_v50  ;;  %v835_v38 = vpop.permute.xlu1 %834 }
 0x3ac   : > { %936 = vmatpush1.msra.mxu1 %v882_v53  ;;  %v879_v59 = vsel %vm426_vm0, %v835_v38, %v837_v37 }
 0x3ad   : > { %v827_v25 = vpop.permute.xlu0 %826  ;;  %937 = vmatprep.subr.mxu1 %v881_v54 }
 0x3ae   : > { %938 = vmatpush1.msra.mxu1 %v880_v57  ;;  %v876_v5 = vsel %vm426_vm0, %v827_v25, %v829_v61 }
 0x3af   : > { %939 = vmatprep.subr.mxu1 %v879_v59  ;;  %v833_v60 = vpop.permute.xlu1 %832 }
 0x3b0   : > { %v878_v2 = vsel %vm426_vm0, %v833_v60, %v835_v38 }
 0x3b1   : > { %v825_v3 = vpop.permute.xlu0 %824  ;;  %940 = vmatpush1.msra.mxu1 %v878_v2 }
 0x3b2   : > { %941 = vmatprep.subr.mxu1 %v877_v4  ;;  %v875_v6 = vsel %vm426_vm0, %v1506_v32, %v825_v3 }
 0x3b3   : > { %942 = vmatpush1.msra.mxu1 %v876_v5  ;;  %v821_v7 = vpop.permute.xlu1 %820 }
 0x3b4   : > { %943 = vmatprep.subr.mxu1 %v875_v6  ;;  %v874_v9 = vsel %vm426_vm0, %v821_v7, %v1506_v32 }
 0x3b5   : > { %944 = vmatpush1.msra.mxu1 %v874_v9 }
 0x3b6   : > { %1057 = vmatmul.mubr.msk.f32.vlgmr.msra.gmra.mxu1 %vm623_vm13, %v810_v8 }
 0x3be   : > { %v815_v11 = vpop.permute.xlu0 %814 }
 0x476   : > { %v979_v12 = vpop.f32.mrf.mxu1 }
 0x477   : > { %v980_v13 = vadd.f32 %v979_v12, %v815_v11 }
 0x478   : > { %v981_v14 = vpop.f32.mrf.mxu1 }
 0x479   : > { %v984_v15 = vmul.f32 0.1, %v980_v13  ;;  %v982_v16 = vadd.f32 %v981_v14, %v815_v11 }
 0x47b   : > { %v986_v17 = vmax.f32 %v980_v13, %v984_v15  ;;  %v985_v18 = vmul.f32 0.1, %v982_v16 }
 0x47d   : > { %988 = vst [vmem:[%s251_s13] sm:$0xff] %v986_v17  ;;  %v987_v19 = vmax.f32 %v982_v16, %v985_v18 }
 0x47f   : > { %989 = vst [vmem:[%s251_s13 + $0x8] sm:$0xff] %v987_v19 }
 0x480 PF: > { %s16_s21 = sadd.s32 1, %s1092_s21  }
 0x481   : > { %p13_p4 = scmp.ge.s32.totalorder %s16_s21, 4  }
 0x483   :  { %15 = sbr.rel (!%p13_p4) target bundleno = 1 (0x1), region = 74 }

</bundles_post_ra>
